<compile_context>
chip_gen: v5e
topology: v5e:2x2
jax: 0.10.0
libtpu: 0.0.40
codegen_flags: <defaults>
</compile_context>

<pallas_src>
import jax
import jax.numpy as jnp
from jax.experimental import pallas as pl
from jax.experimental.pallas import tpu as pltpu

EPS = 1e-5

_MAX_TILE_ROWS = 8192      # cap on rows per tile (keeps trace / vreg pressure sane)
_MIN_GRID_STEPS = 4        # aim for >=4 steps so megacore shards rows evenly


def _vmem_budget_and_limit():
    """(tile byte budget, scoped-VMEM limit) adapted to the current chip."""
    try:
        cap = pltpu.get_tpu_info().vmem_capacity_bytes
    except Exception:
        cap = 64 * 1024 * 1024               # safe fallback (v7x per-TC VMEM)
    limit = min(cap // 2, 64 * 1024 * 1024)  # what we ask Mosaic for
    budget = (limit * 5) // 8                # headroom for Mosaic internals
    return budget, limit


def _ln_kernel_bias(x_ref, w_ref, b_ref, o_ref):
    # x_ref: (TR, D) tile of rows; w_ref/b_ref: (1, D) broadcast params.
    x = x_ref[...].astype(jnp.float32)
    w = w_ref[...].astype(jnp.float32)
    b = b_ref[...].astype(jnp.float32)
    mean = jnp.mean(x, axis=-1, keepdims=True)           # (TR, 1)
    xc = x - mean
    var = jnp.mean(xc * xc, axis=-1, keepdims=True)      # biased var (PyTorch LN)
    y = xc * jax.lax.rsqrt(var + EPS) * w + b
    o_ref[...] = y.astype(o_ref.dtype)


def _ln_kernel_nobias(x_ref, w_ref, o_ref):
    x = x_ref[...].astype(jnp.float32)
    w = w_ref[...].astype(jnp.float32)
    mean = jnp.mean(x, axis=-1, keepdims=True)
    xc = x - mean
    var = jnp.mean(xc * xc, axis=-1, keepdims=True)
    y = xc * jax.lax.rsqrt(var + EPS) * w
    o_ref[...] = y.astype(o_ref.dtype)


def _choose_tile_rows(R, D, itemsize, budget):
    """Largest power-of-two row tile that fits the VMEM budget.

    Per-row cost model: double-buffered input + output tiles in the storage
    dtype (4 * itemsize * D bytes) plus ~3 fp32 temporaries (x, xc, y) inside
    the kernel body (12 * D bytes).
    """
    sub = {4: 8, 2: 16, 1: 32}.get(itemsize, 8)   # sublane multiple per dtype
    if R <= sub:
        return R                                   # single full-extent block
    bytes_per_row = D * (4 * itemsize + 3 * 4)
    max_rows = max(sub, budget // bytes_per_row)
    tr = sub
    while tr * 2 <= min(max_rows, _MAX_TILE_ROWS):
        tr *= 2
    # Prefer >= _MIN_GRID_STEPS grid steps so the two v7x TensorCores get
    # balanced work; never go below the sublane multiple.
    while tr > sub and pl.cdiv(R, tr) < _MIN_GRID_STEPS:
        tr //= 2
    return tr


@jax.jit
def layer_norm(x, weight, bias=None):
    """LayerNorm over the last dim of x. x: (..., D); weight/bias: (D,)."""
    orig_shape = x.shape
    D = orig_shape[-1]
    R = 1
    for s in orig_shape[:-1]:
        R *= s
    xr = x.reshape(R, D)
    w2 = weight.reshape(1, D)

    itemsize = jnp.dtype(x.dtype).itemsize
    budget, vmem_limit = _vmem_budget_and_limit()
    tr = _choose_tile_rows(R, D, itemsize, budget)
    grid = (pl.cdiv(R, tr),)   # no input padding; Pallas masks the tail block

    x_spec = pl.BlockSpec((tr, D), lambda i: (i, 0))     # row tile of x
    w_spec = pl.BlockSpec((1, D), lambda i: (0, 0))      # weight (resident)
    o_spec = pl.BlockSpec((tr, D), lambda i: (i, 0))     # row tile of out

    cparams = pltpu.CompilerParams(
        dimension_semantics=("parallel",),
        vmem_limit_bytes=vmem_limit,
    )
    out_shape = jax.ShapeDtypeStruct((R, D), x.dtype)

    if bias is None:
        out = pl.pallas_call(
            _ln_kernel_nobias,
            out_shape=out_shape,
            grid_spec=pltpu.PrefetchScalarGridSpec(
                num_scalar_prefetch=0,
                grid=grid,
                in_specs=[x_spec, w_spec],
                out_specs=o_spec,
            ),
            compiler_params=cparams,
        )(xr, w2)
    else:
        b2 = bias.reshape(1, D)
        b_spec = pl.BlockSpec((1, D), lambda i: (0, 0))  # bias (resident)
        out = pl.pallas_call(
            _ln_kernel_bias,
            out_shape=out_shape,
            grid_spec=pltpu.PrefetchScalarGridSpec(
                num_scalar_prefetch=0,
                grid=grid,
                in_specs=[x_spec, w_spec, b_spec],
                out_specs=o_spec,
            ),
            compiler_params=cparams,
        )(xr, w2, b2)

    return out.reshape(orig_shape)


if __name__ == "__main__":
    key = jax.random.PRNGKey(0)
    B, T, D = 2, 8, 32

    kx, kw, kb = jax.random.split(key, 3)
    x = jax.random.normal(kx, (B, T, D), dtype=jnp.float32)

    # nn.Module init semantics: weight = ones, bias = zeros; perturb slightly so
    # the affine path is actually exercised.
    weight = jnp.ones((D,), dtype=jnp.float32) + 0.01 * jax.random.normal(kw, (D,))
    bias = jnp.zeros((D,), dtype=jnp.float32) + 0.01 * jax.random.normal(kb, (D,))

    # Reference (plain JAX) layer norm.
    mean = jnp.mean(x, axis=-1, keepdims=True)
    var = jnp.mean((x - mean) ** 2, axis=-1, keepdims=True)
    xn = (x - mean) * jax.lax.rsqrt(var + EPS)

    # With-bias path (LayerNorm(n_dim, bias=True)).
    y = jax.block_until_ready(layer_norm(x, weight, bias))
    ref = xn * weight + bias
    assert jnp.allclose(y, ref, atol=1e-5, rtol=1e-5), "mismatch vs reference (bias)"

    # bias=None path (LayerNorm(n_dim, bias=False)).
    y_nb = jax.block_until_ready(layer_norm(x, weight))
    ref_nb = xn * weight
    assert jnp.allclose(y_nb, ref_nb, atol=1e-5, rtol=1e-5), "mismatch vs reference (no bias)"

    print("KERNEL_OK")
</pallas_src>

<mosaic_0001>
module attributes {stable_mosaic.version = 11 : i64} {
  func.func @_ln_kernel_bias(%arg0: i32, %arg1: memref<8x32xf32, #tpu.memory_space<vmem>>, %arg2: memref<1x32xf32, #tpu.memory_space<vmem>>, %arg3: memref<1x32xf32, #tpu.memory_space<vmem>>, %arg4: memref<8x32xf32, #tpu.memory_space<vmem>>) attributes {dimension_semantics = [#tpu.dimension_semantics<parallel>], iteration_bounds = array<i64: 2>, scalar_prefetch = 0 : i64, scratch_operands = 0 : i64, tpu.core_type = #tpu.core_type<tc>, window_params = [{transform_indices = @transform_0, window_bounds = array<i64: 8, 32>}, {pipeline_mode = #tpu.pipeline_mode<synchronous>, transform_indices = @transform_1, window_bounds = array<i64: 1, 32>}, {pipeline_mode = #tpu.pipeline_mode<synchronous>, transform_indices = @transform_2, window_bounds = array<i64: 1, 32>}, {transform_indices = @transform_3, window_bounds = array<i64: 8, 32>}]} {
    %c0 = arith.constant 0 : index
    %c0_0 = arith.constant 0 : index
    %0 = vector.load %arg1[%c0, %c0_0] : memref<8x32xf32, #tpu.memory_space<vmem>>, vector<8x32xf32>
    %c0_1 = arith.constant 0 : index
    %c0_2 = arith.constant 0 : index
    %1 = vector.load %arg2[%c0_1, %c0_2] : memref<1x32xf32, #tpu.memory_space<vmem>>, vector<1x32xf32>
    %c0_3 = arith.constant 0 : index
    %c0_4 = arith.constant 0 : index
    %2 = vector.load %arg3[%c0_3, %c0_4] : memref<1x32xf32, #tpu.memory_space<vmem>>, vector<1x32xf32>
    %cst = arith.constant dense<0.000000e+00> : vector<8xf32>
    %3 = vector.multi_reduction <add>, %0, %cst [1] : vector<8x32xf32> to vector<8xf32>
    %4 = vector.shape_cast %3 : vector<8xf32> to vector<8x1xf32>
    %cst_5 = arith.constant 3.200000e+01 : f32
    %5 = vector.broadcast %cst_5 : f32 to vector<8x1xf32>
    %6 = arith.divf %4, %5 : vector<8x1xf32>
    %7 = vector.broadcast %6 : vector<8x1xf32> to vector<8x32xf32>
    %8 = arith.subf %0, %7 : vector<8x32xf32>
    %9 = arith.mulf %8, %8 : vector<8x32xf32>
    %cst_6 = arith.constant dense<0.000000e+00> : vector<8xf32>
    %10 = vector.multi_reduction <add>, %9, %cst_6 [1] : vector<8x32xf32> to vector<8xf32>
    %11 = vector.shape_cast %10 : vector<8xf32> to vector<8x1xf32>
    %cst_7 = arith.constant 3.200000e+01 : f32
    %12 = vector.broadcast %cst_7 : f32 to vector<8x1xf32>
    %13 = arith.divf %11, %12 : vector<8x1xf32>
    %cst_8 = arith.constant 9.99999974E-6 : f32
    %14 = vector.broadcast %cst_8 : f32 to vector<8x1xf32>
    %15 = arith.addf %13, %14 : vector<8x1xf32>
    %16 = math.rsqrt %15 : vector<8x1xf32>
    %17 = vector.broadcast %16 : vector<8x1xf32> to vector<8x32xf32>
    %18 = arith.mulf %8, %17 : vector<8x32xf32>
    %19 = vector.broadcast %1 : vector<1x32xf32> to vector<8x32xf32>
    %20 = arith.mulf %18, %19 : vector<8x32xf32>
    %21 = vector.broadcast %2 : vector<1x32xf32> to vector<8x32xf32>
    %22 = arith.addf %20, %21 : vector<8x32xf32>
    %c0_9 = arith.constant 0 : index
    %c0_10 = arith.constant 0 : index
    %23 = vector.load %arg4[%c0_9, %c0_10] : memref<8x32xf32, #tpu.memory_space<vmem>>, vector<8x32xf32>
    tpu.vector_store %arg4[%c0_9, %c0_10], %22 {strides = array<i32>} : memref<8x32xf32, #tpu.memory_space<vmem>>, vector<8x32xf32>,
    return
  }
  func.func @transform_0(%arg0: i32) -> (i32, i32) {
    %c0_i32 = arith.constant 0 : i32
    %c0_i32_0 = arith.constant 0 : i32
    return %arg0, %c0_i32 : i32, i32
  }
  func.func @transform_1(%arg0: i32) -> (i32, i32) {
    %c0_i32 = arith.constant 0 : i32
    %c0_i32_0 = arith.constant 0 : i32
    %c0_i32_1 = arith.constant 0 : i32
    return %c0_i32, %c0_i32_0 : i32, i32
  }
  func.func @transform_2(%arg0: i32) -> (i32, i32) {
    %c0_i32 = arith.constant 0 : i32
    %c0_i32_0 = arith.constant 0 : i32
    %c0_i32_1 = arith.constant 0 : i32
    return %c0_i32, %c0_i32_0 : i32, i32
  }
  func.func @transform_3(%arg0: i32) -> (i32, i32) {
    %c0_i32 = arith.constant 0 : i32
    %c0_i32_0 = arith.constant 0 : i32
    return %arg0, %c0_i32 : i32, i32
  }
}

</mosaic_0001>

<bundles_post_ra>
// kernel: layer_norm.1
= control target key start
LH: loop header
LB: loop body
LE: loop exit
PB: predicated region body
PF: predicated region fallthrough
CT: control target
= control target key end

     0   :  { %8 = vsyncpa [#allocation3], 0  ;;  %s640_s0 = inlined_call_operand.hbm [shape: f32[16,32], index: 0, kind: input, shape index: {}]   ;;  %s641_s1 = inlined_call_operand.vmem [shape: f32[1,32], index: 1, kind: input, shape index: {}]   ;;  %s642_s2 = inlined_call_operand.vmem [shape: f32[1,32], index: 2, kind: input, shape index: {}]   ;;  %s643_s3 = inlined_call_operand.hbm [shape: f32[16,32], index: 3, kind: output, shape index: {}]  }
   0x1   :  { %10 = vsyncpa [#allocation3 + $0x1], 0 }
   0x2   :  { %11 = vsyncpa [#allocation4], 0 }
   0x3   :  { %13 = vsyncpa [#allocation4 + $0x1], 0  ;;  %s500_s12 = smov 0   ;;  %s502_s13 = smov 0  }
   0x4   :  { %s504_s14 = smov 0   ;;  %s506_s15 = smov 0  }
   0x5 LB: > { %s521_s16 = sadd.s32 4294967295, %s477_s15   ;;  %s316_s17 = sadd.s32 4294967294, %s477_s15   ;;  %s477_s15 = sphi %s506_s15, %s653_s15   ;;  %s473_s14 = sphi %s504_s14, %s652_s14   ;;  %s469_s13 = sphi %s502_s13, %s651_s13   ;;  %s465_s12 = sphi %s500_s12, %s650_s12  }
   0x6   : > { %s525_s18 = sadd.s32 1, %s477_s15   ;;  %s26_s19 = sadd.s32 1, %s473_s14 }
   0x7   : > { %s23_s20 = ssub.s32 %s477_s15, %s525_s18  ;;  %p33_p0 = scmp.ne.s32.totalorder %s473_s14, %s469_s13 }
   0x8   : > { %p24_p1 = scmp.eq.s32.totalorder %s23_s20, 0  ;;  %p34_p2 = scmp.eq.s32.totalorder %s477_s15, 0 }
   0x9   : > { %p39_p3 = scmp.ne.s32.totalorder %s469_s13, %s465_s12  ;;  %p40_p4 = scmp.eq.s32.totalorder %s521_s16, 0 }
   0xa   : > { %s537_s21 = scalar_select %p24_p1, %s473_s14, %s26_s19  }
   0xb   : > { %p539_p5 = por %p34_p2, %p33_p0  ;;  %p543_p6 = por %p40_p4, %p39_p3 }
   0xc   : > { %p105_p7 = scmp.eq.s32.totalorder %s521_s16, 1  ;;  %p111_p8 = scmp.eq.s32.totalorder %s316_s17, 1 }
   0xd   : > { %p340_p10 = scmp.lt.s32.totalorder %s477_s15, 2  ;;  %s137_s26 = sand.u32 1, %s473_s14  }
   0xe   : > { %p550_p11 = por %p105_p7, %p33_p0  ;;  %p554_p12 = por %p111_p8, %p39_p3 }
   0xf   : > { %s320_s27 = sshll.u32 %s477_s15, 3  ;;  %s319_s28 = sshll.u32 %s137_s26, 3 }
  0x10   : > { %s145_s4 = scalar_lea.hbm %s640_s0, %s320_s27  ;;  %s141_s6 = scalar_lea.vmem [#allocation2], %s319_s28 }
  0x11   : > { %s147_s5 = sshll.u32 %s145_s4, 4  ;;  %s149_s7 = sshll.u32 %s141_s6, 4  ;;  %s148_s5 = int_to_ptr.hbm [resolvable:$true] %s147_s5  ;;  %s150_s7 = int_to_ptr.vmem [resolvable:$true] %s149_s7 }
  0x12   : > { %p565_p13 = pnand %p340_p10, %p539_p5  ;;  %p321_p0 = scmp.ge.s32.totalorder %s477_s15, 1 }
  0x13   : > { %p154_p1 = scmp.lt.s32.totalorder %s477_s15, 3  ;;  %s138_s9 = scalar_lea.sflag [#allocation3], %s137_s26 }
  0x14   : > { %s381_s10 = sshra.s32 %s148_s5, 4  ;;  %p385_p3 = pneg %p565_p13  ;;  %s382_s10 = int_to_ptr.hbm [resolvable:$true] %s381_s10 }
  0x15   : > { %s383_s11 = scalar_lea.hbm %s382_s10, 8  ;;  %s388_s20 = scalar_lea.hbm %s640_s0, 16 }
  0x16   : > { %p384_p2 = scmp.ne.s32.totalorder %s382_s10, %s383_s11  ;;  %p389_p5 = scmp.lt.s32.totalorder %s382_s10, %s640_s0 }
  0x17   : > { %p390_p8 = scmp.lt.s32.totalorder %s388_s20, %s383_s11 }
  0x18   : > { %p386_p4 = pnand %p385_p3, %p384_p2 }
  0x19   : > { %p391_p10 = por %p390_p8, %p389_p5 }
  0x1a   : > { %p387_p7 = pneg %p386_p4 }
  0x1c   : > { %p392_p9 = pnand %p391_p10, %p387_p7 }
  0x1e   : > { %395 = shalt.err (!%p392_p9)
}
  0x1f   : > { %335 = dma.hbm_to_vmem [thread:$0]  (!%p565_p13), %s148_s5, 128, %s150_s7, %s138_s9  }
  0x20   : > { %p155_p2 = pnand %p321_p0, %p154_p1 }
  0x21   : > { %s586_s26 = sand.u32 (!%p155_p2), 1, %s469_s13  }
  0x22   : > { %158 = sbr.rel (%p155_p2) target bundleno = 312 (0x138), region = 32  ;;  %s322_s28 = sshll.u32 (!%p155_p2), %s586_s26, 3 }
  0x23   : > { %s161_s29 = scalar_lea.sflag (!%p155_p2), [#allocation3], %s586_s26  ;;  %s164_s30 = scalar_lea.vmem (!%p155_p2), [#allocation2], %s322_s28 }
  0x27   : > { %456 = dma.done.wait (%p543_p6), %s161_s29, 128  }
  0x28   : > { %458 = vsyncadd (%p543_p6), %s161_s29, 4294967168  ;;  %vm191_vm0 = vcmask 261120   ;;  %v188_v0 = vld [vmem:[%s164_s30] sm:$0xff]  ;;  %v479_v2 = vmov 32.0   ;;  %s325_s23 = sshll.u32 %s521_s16, 3  ;;  %s187_s16 = scalar_lea.vmem [#allocation5], %s322_s28 }
  0x29   : > { %v192_v1 = vsel %vm191_vm0, %v188_v0, 0.0  ;;  %377 = vrcp.f32 %v479_v2  ;;  %v375_v23 = vld [vmem:[%s641_s1] ss:$0 sm:$0xff]  ;;  %s241_s8 = scalar_lea.hbm %s643_s3, %s325_s23  ;;  %s243_s11 = sshll.u32 %s187_s16, 4  ;;  %s244_s11 = int_to_ptr.vmem [resolvable:$true] %s243_s11 }
  0x2a   : > { %193 = vadd.xlane.f32.xlu0 %v192_v1  ;;  %v376_v26 = vld [vmem:[%s642_s2] ss:$0 sm:$0xff]  ;;  %s245_s17 = sshll.u32 %s241_s8, 4  ;;  %s231_s19 = scalar_lea.sflag [#allocation4], %s586_s26  ;;  %s246_s17 = int_to_ptr.hbm [resolvable:$true] %s245_s17 }
  0x2b   : > { %s425_s20 = sshra.s32 %s246_s17, 4  ;;  %s431_s28 = scalar_lea.hbm %s643_s3, 16  ;;  %s426_s20 = int_to_ptr.hbm [resolvable:$true] %s425_s20 }
  0x2c   : > { %s427_s22 = scalar_lea.hbm %s426_s20, 8  ;;  %p432_p0 = scmp.lt.s32.totalorder %s426_s20, %s643_s3 }
  0x2d   : > { %p428_p6 = scmp.ne.s32.totalorder %s426_s20, %s427_s22  ;;  %p433_p1 = scmp.lt.s32.totalorder %s431_s28, %s427_s22 }
  0x2f   : > { %v378_v3 = vpop.eup %377  ;;  %p429_p9 = pnand %p428_p6, %p550_p11  ;;  %p434_p3 = por %p433_p1, %p432_p0 }
  0x30   : > { %v196_v4 = vmul.f32 32.0, %v378_v3  ;;  %vm200_vm1 = vweird.f32 %v378_v3 }
  0x31   : > { %p430_p13 = pneg %p429_p9 }
  0x32   : > { %v197_v5 = vsub.f32 1.0, %v196_v4 }
  0x33   : > { %p435_p4 = pnand %p434_p3, %p430_p13 }
  0x34   : > { %v198_v6 = vmul.f32 %v378_v3, %v197_v5 }
  0x36   : > { %v199_v7 = vadd.f32 %v378_v3, %v198_v6 }
  0x38   : > { %v201_v8 = vsel %vm200_vm1, %v378_v3, %v199_v7 }
  0x9d   : > { %v194_v9 = vpop.xlane.xlu0 %193 }
  0x9e   : > { %v202_v10 = vmul.f32 %v201_v8, %v194_v9 }
  0xa0   : > { %v203_v11 = vsub.f32 %v188_v0, %v202_v10 }
  0xa2   : > { %v204_v12 = vmul.f32 %v203_v11, %v203_v11 }
  0xa4   : > { %v205_v13 = vsel %vm191_vm0, %v204_v12, 0.0 }
  0xa5   : > { %206 = vadd.xlane.f32.xlu0 %v205_v13 }
 0x118   : > { %v207_v14 = vpop.xlane.xlu0 %206 }
 0x119   : > { %v208_v15 = vmul.f32 %v207_v14, %v201_v8 }
 0x11b   : > { %v209_v16 = vadd.f32 1e-05, %v208_v15 }
 0x11d   : > { %379 = vrsqrt.f32 %v209_v16  ;;  %vm216_vm3 = vweird.f32 %v209_v16 }
 0x123   : > { %v380_v17 = vpop.eup %379 }
 0x124   : > { %v211_v18 = vmul.f32 %v380_v17, %v209_v16  ;;  %vm217_vm2 = vweird.f32 %v380_v17 }
 0x125   : > { %vm218_vm4 = vmor %vm216_vm3, %vm217_vm2 }
 0x126   : > { %v212_v19 = vmul.f32 %v380_v17, %v211_v18 }
 0x128   : > { %v213_v20 = vmul.f32 0.5, %v212_v19 }
 0x12a   : > { %v214_v21 = vsub.f32 1.5, %v213_v20 }
 0x12c   : > { %v215_v22 = vmul.f32 %v380_v17, %v214_v21 }
 0x12e   : > { %v219_v24 = vsel %vm218_vm4, %v380_v17, %v215_v22 }
 0x12f   : > { %v220_v25 = vmul.f32 %v219_v24, %v203_v11 }
 0x131   : > { %v224_v27 = vmul.f32 %v375_v23, %v220_v25 }
 0x133   : > { %v228_v28 = vadd.f32 %v376_v26, %v224_v27 }
 0x135   : > { %229 = vst.msk [vmem:[%s187_s16] sm:$0xff] %vm191_vm0, %v228_v28 }
 0x136   : > { %438 = shalt.err (!%p435_p4)
}
 0x137   : > { %330 = dma.vmem_to_hbm [thread:$0]  (%p550_p11), %s244_s11, 128, %s246_s17, %s231_s19  }
 0x138 PF: > { %s257_s26 = sand.u32 1, %s465_s12   ;;  %p649_p7 = scmp.ge.s32.totalorder %s477_s15, 2 }
 0x139   : > { %s258_s4 = scalar_lea.sflag [#allocation4], %s257_s26 }
 0x13a   : > { %p337_p5 = pnand %p649_p7, %p554_p12 }
 0x13c   : > { %p338_p8 = pneg %p337_p5 }
 0x13e   : > { %460 = dma.done.wait (%p338_p8), %s258_s4, 128  }
 0x13f   : > { %462 = vsyncadd (%p338_p8), %s258_s4, 4294967168  ;;  %p16_p10 = scmp.ge.s32.totalorder %s525_s18, 4   ;;  %s650_s12 = smov %s469_s13 }
 0x140   : > { %s651_s13 = smov %s473_s14  ;;  %s652_s14 = smov %s537_s21 }
 0x141   : > { %s653_s15 = smov %s525_s18  ;;  %18 = sbr.rel (!%p16_p10) target bundleno = 5 (0x5), region = 77 }
 0x146   :  { %264 = vsyncpa [#allocation3], 1 }
 0x147   :  { %266 = vsyncpa [#allocation3 + $0x1], 1 }
 0x148   :  { %267 = vsyncpa [#allocation4], 1 }
 0x149   :  { %269 = vsyncpa [#allocation4 + $0x1], 1 }

</bundles_post_ra>
